<compile_context>
chip_gen: v7x
topology: tpu7x:2x2x1
jax: 0.10.0
libtpu: 0.0.40
codegen_flags: <defaults>
</compile_context>

<pallas_src>
import math
import jax
import jax.numpy as jnp
from jax.experimental import pallas as pl
from jax.experimental.pallas import tpu as pltpu

EPS = 1e-5  # BatchNorm eps (PyTorch default)


# ---------------------------------------------------------------------------
# Fused conv2d (stride 1, arbitrary kernel size / dilation) + affine + ReLU kernel
# ---------------------------------------------------------------------------
def _make_conv_bn_kernel(H_out, W_out, KH, KW, dh, dw, Cin, Cout, relu):
    """Kernel factory; all shape params are static Python ints."""

    def kernel(x_ref, w_ref, s_ref, b_ref, o_ref):
        # x_ref: (Hp, Wp, Cin) padded input for this batch element
        # w_ref: (KH*KW*Cin, Cout)   tap-major weights
        # s_ref, b_ref: (1, Cout)    folded BN scale / shift
        # o_ref: (H_out*W_out, Cout)
        x = x_ref[...].astype(jnp.float32)
        w = w_ref[...].astype(jnp.float32)

        acc = jnp.zeros((H_out * W_out, Cout), jnp.float32)
        # Static unrolled loop over kernel taps: each tap is an (N, Cin) @ (Cin, Cout)
        # MXU matmul with f32 accumulation (no im2col buffer, no transposes).
        for kh in range(KH):
            for kw in range(KW):
                patch = x[kh * dh: kh * dh + H_out, kw * dw: kw * dw + W_out, :]
                patch2 = patch.reshape(H_out * W_out, Cin)
                tap = kh * KW + kw
                w_tap = w[tap * Cin:(tap + 1) * Cin, :]
                acc = acc + jnp.dot(patch2, w_tap,
                                    preferred_element_type=jnp.float32)

        y = acc * s_ref[...] + b_ref[...]          # folded BN (and conv bias) affine
        if relu:
            y = jnp.maximum(y, 0.0)
        o_ref[...] = y.astype(o_ref.dtype)

    return kernel


def conv_bn_act(x_nhwc, w_oihw, scale, shift, *,
                padding=(0, 0), dilation=(1, 1), relu=False):
    """x: (B, H, W, Cin) f32; w: (Cout, Cin, KH, KW); returns (B, H_out, W_out, Cout)."""
    B, H, W, Cin = x_nhwc.shape
    Cout, Cin_w, KH, KW = w_oihw.shape
    assert Cin_w == Cin
    ph, pw = padding
    dh, dw = dilation
    Hp, Wp = H + 2 * ph, W + 2 * pw
    H_out = Hp - dh * (KH - 1)
    W_out = Wp - dw * (KW - 1)

    # spatial zero-padding + weight re-layout are pure glue
    x_pad = jnp.pad(x_nhwc, ((0, 0), (ph, ph), (pw, pw), (0, 0)))
    # (Cout, Cin, KH, KW) -> (KH, KW, Cin, Cout) -> (KH*KW*Cin, Cout)
    w_taps = jnp.transpose(w_oihw, (2, 3, 1, 0)).reshape(KH * KW * Cin, Cout)
    s2 = jnp.asarray(scale, jnp.float32).reshape(1, Cout)
    b2 = jnp.asarray(shift, jnp.float32).reshape(1, Cout)

    kernel = _make_conv_bn_kernel(H_out, W_out, KH, KW, dh, dw, Cin, Cout, relu)

    out_flat = pl.pallas_call(
        kernel,
        out_shape=jax.ShapeDtypeStruct((B, H_out * W_out, Cout), x_nhwc.dtype),
        grid_spec=pltpu.PrefetchScalarGridSpec(
            num_scalar_prefetch=0,
            grid=(B,),
            in_specs=[
                pl.BlockSpec((pl.Squeezed(), Hp, Wp, Cin), lambda b: (b, 0, 0, 0)),
                pl.BlockSpec((KH * KW * Cin, Cout), lambda b: (0, 0)),
                pl.BlockSpec((1, Cout), lambda b: (0, 0)),
                pl.BlockSpec((1, Cout), lambda b: (0, 0)),
            ],
            out_specs=pl.BlockSpec((pl.Squeezed(), H_out * W_out, Cout),
                                   lambda b: (b, 0, 0)),
        ),
        compiler_params=pltpu.CompilerParams(
            dimension_semantics=("parallel",),          # batch elems are independent
            vmem_limit_bytes=32 * 1024 * 1024,
        ),
    )(x_pad, w_taps, s2, b2)

    return out_flat.reshape(B, H_out, W_out, Cout)


# ---------------------------------------------------------------------------
# BN folding helpers
# ---------------------------------------------------------------------------
def _fold_bn(bn):
    """(gamma, beta, mean, var) -> (scale, shift) for y = scale*x + shift."""
    gamma, beta, mean, var = bn
    s = gamma / jnp.sqrt(var + EPS)
    return s, beta - mean * s


def _compose_affine(inner, outer):
    """outer(inner(x)) for two affines (inner applied first)."""
    s1, b1 = inner
    s2, b2 = outer
    return s2 * s1, s2 * b1 + b2


# ---------------------------------------------------------------------------
# SC forward using the Pallas kernels
# ---------------------------------------------------------------------------
def sc_forward(x_nchw, p):
    B, C, H, W = x_nchw.shape
    # single layout change at entry; all stages stay channel-last until the end
    x_nhwc = jnp.transpose(x_nchw, (0, 2, 3, 1))
    x0, x1, x2, x3 = jnp.split(x_nhwc, 4, axis=-1)

    bn0 = _fold_bn(p["b0_bn"])
    # branch0 -> ba0 -> relu
    y0 = conv_bn_act(x0, p["b0_w"], *_compose_affine(bn0, _fold_bn(p["ba0"])), relu=True)
    # original forward: y3 also uses branch0 (not branch3), then ba3 -> relu
    y3 = conv_bn_act(x3, p["b0_w"], *_compose_affine(bn0, _fold_bn(p["ba3"])), relu=True)

    # branch1: 1x1, (1,3), (3,1), 3x3 dil=3 ; last conv's BN composed with ba1, + relu
    t = conv_bn_act(x1, p["b1_w1"], *_fold_bn(p["b1_bn1"]))
    t = conv_bn_act(t, p["b1_w2"], *_fold_bn(p["b1_bn2"]), padding=(0, 1))
    t = conv_bn_act(t, p["b1_w3"], *_fold_bn(p["b1_bn3"]), padding=(1, 0))
    y1 = conv_bn_act(t, p["b1_w4"],
                     *_compose_affine(_fold_bn(p["b1_bn4"]), _fold_bn(p["ba1"])),
                     padding=(3, 3), dilation=(3, 3), relu=True)

    # branch2: 1x1, (1,5), (5,1), 3x3 dil=5
    t = conv_bn_act(x2, p["b2_w1"], *_fold_bn(p["b2_bn1"]))
    t = conv_bn_act(t, p["b2_w2"], *_fold_bn(p["b2_bn2"]), padding=(0, 2))
    t = conv_bn_act(t, p["b2_w3"], *_fold_bn(p["b2_bn3"]), padding=(2, 0))
    y2 = conv_bn_act(t, p["b2_w4"],
                     *_compose_affine(_fold_bn(p["b2_bn4"]), _fold_bn(p["ba2"])),
                     padding=(5, 5), dilation=(5, 5), relu=True)

    y = jnp.concatenate([y0, y1, y2, y3], axis=-1)          # (B, H, W, 4c)

    # final 3x3 conv (with bias) + BN + ReLU, conv bias folded into the shift
    fs, fb = _fold_bn(p["f_bn"])
    out = conv_bn_act(y, p["f_w"], fs, fs * p["f_b"] + fb, padding=(1, 1), relu=True)
    return jnp.transpose(out, (0, 3, 1, 2))                 # back to NCHW


# ---------------------------------------------------------------------------
# Pure-JAX reference (lax conv + explicit eval-mode BN), mirrors the PyTorch forward
# ---------------------------------------------------------------------------
def _conv2d_ref(x, w, padding, dilation):
    return jax.lax.conv_general_dilated(
        x, w, window_strides=(1, 1),
        padding=[(padding[0], padding[0]), (padding[1], padding[1])],
        rhs_dilation=dilation,
        dimension_numbers=("NCHW", "OIHW", "NCHW"))


def _bn_ref(x, bn):
    gamma, beta, mean, var = bn
    inv = (gamma / jnp.sqrt(var + EPS))[None, :, None, None]
    return (x - mean[None, :, None, None]) * inv + beta[None, :, None, None]


def _basic_ref(x, w, bn, padding=(0, 0), dilation=(1, 1)):
    return _bn_ref(_conv2d_ref(x, w, padding, dilation), bn)


def sc_reference(x, p):
    x0, x1, x2, x3 = jnp.split(x, 4, axis=1)
    y0 = jax.nn.relu(_bn_ref(_basic_ref(x0, p["b0_w"], p["b0_bn"]), p["ba0"]))
    t = _basic_ref(x1, p["b1_w1"], p["b1_bn1"])
    t = _basic_ref(t, p["b1_w2"], p["b1_bn2"], padding=(0, 1))
    t = _basic_ref(t, p["b1_w3"], p["b1_bn3"], padding=(1, 0))
    t = _basic_ref(t, p["b1_w4"], p["b1_bn4"], padding=(3, 3), dilation=(3, 3))
    y1 = jax.nn.relu(_bn_ref(t, p["ba1"]))
    t = _basic_ref(x2, p["b2_w1"], p["b2_bn1"])
    t = _basic_ref(t, p["b2_w2"], p["b2_bn2"], padding=(0, 2))
    t = _basic_ref(t, p["b2_w3"], p["b2_bn3"], padding=(2, 0))
    t = _basic_ref(t, p["b2_w4"], p["b2_bn4"], padding=(5, 5), dilation=(5, 5))
    y2 = jax.nn.relu(_bn_ref(t, p["ba2"]))
    y3 = jax.nn.relu(_bn_ref(_basic_ref(x3, p["b0_w"], p["b0_bn"]), p["ba3"]))
    y = jnp.concatenate([y0, y1, y2, y3], axis=1)
    z = _conv2d_ref(y, p["f_w"], (1, 1), (1, 1)) + p["f_b"][None, :, None, None]
    return jax.nn.relu(_bn_ref(z, p["f_bn"]))


# ---------------------------------------------------------------------------
# Deterministic parameter construction
# ---------------------------------------------------------------------------
def make_params(key, c):
    keys = iter(jax.random.split(key, 128))

    def conv_w(cout, cin, kh, kw):
        bound = 1.0 / math.sqrt(cin * kh * kw)
        return jax.random.uniform(next(keys), (cout, cin, kh, kw),
                                  minval=-bound, maxval=bound, dtype=jnp.float32)

    def bn(ch):
        gamma = jax.random.uniform(next(keys), (ch,), minval=0.5, maxval=1.5, dtype=jnp.float32)
        beta = 0.1 * jax.random.normal(next(keys), (ch,), dtype=jnp.float32)
        mean = 0.1 * jax.random.normal(next(keys), (ch,), dtype=jnp.float32)
        var = jax.random.uniform(next(keys), (ch,), minval=0.5, maxval=1.5, dtype=jnp.float32)
        return (gamma, beta, mean, var)

    p = {}
    p["b0_w"] = conv_w(c, c, 1, 1); p["b0_bn"] = bn(c)
    p["b1_w1"] = conv_w(c, c, 1, 1); p["b1_bn1"] = bn(c)
    p["b1_w2"] = conv_w(c, c, 1, 3); p["b1_bn2"] = bn(c)
    p["b1_w3"] = conv_w(c, c, 3, 1); p["b1_bn3"] = bn(c)
    p["b1_w4"] = conv_w(c, c, 3, 3); p["b1_bn4"] = bn(c)
    p["b2_w1"] = conv_w(c, c, 1, 1); p["b2_bn1"] = bn(c)
    p["b2_w2"] = conv_w(c, c, 1, 5); p["b2_bn2"] = bn(c)
    p["b2_w3"] = conv_w(c, c, 5, 1); p["b2_bn3"] = bn(c)
    p["b2_w4"] = conv_w(c, c, 3, 3); p["b2_bn4"] = bn(c)
    p["ba0"] = bn(c); p["ba1"] = bn(c); p["ba2"] = bn(c); p["ba3"] = bn(c)
    p["f_w"] = conv_w(4 * c, 4 * c, 3, 3)
    p["f_b"] = 0.1 * jax.random.normal(next(keys), (4 * c,), dtype=jnp.float32)
    p["f_bn"] = bn(4 * c)
    return p


if __name__ == "__main__":
    B, in_ch, H, W = 2, 4, 16, 16          # SC(in_channels=4) -> input channels = 16
    C = 4 * in_ch

    key = jax.random.PRNGKey(0)
    kx, kp = jax.random.split(key)
    x = jax.random.normal(kx, (B, C, H, W), dtype=jnp.float32)
    params = make_params(kp, in_ch)

    out = sc_forward(x, params)
    out = jax.block_until_ready(out)

    ref = sc_reference(x, params)
    assert out.shape == (B, C, H, W)
    assert jnp.allclose(out, ref, atol=1e-3, rtol=1e-3), \
        float(jnp.max(jnp.abs(out - ref)))

    print("KERNEL_OK")
</pallas_src>

<mosaic_0001>
module attributes {stable_mosaic.version = 11 : i64} {
  func.func @kernel(%arg0: i32, %arg1: memref<1x16x16x4xf32, #tpu.memory_space<vmem>>, %arg2: memref<4x4xf32, #tpu.memory_space<vmem>>, %arg3: memref<1x4xf32, #tpu.memory_space<vmem>>, %arg4: memref<1x4xf32, #tpu.memory_space<vmem>>, %arg5: memref<1x256x4xf32, #tpu.memory_space<vmem>>) attributes {dimension_semantics = [#tpu.dimension_semantics<parallel>], iteration_bounds = array<i64: 2>, scalar_prefetch = 0 : i64, scratch_operands = 0 : i64, tpu.core_type = #tpu.core_type<tc>, window_params = [{transform_indices = @transform_0, window_bounds = array<i64: 1, 16, 16, 4>}, {pipeline_mode = #tpu.pipeline_mode<synchronous>, transform_indices = @transform_1, window_bounds = array<i64: 4, 4>}, {pipeline_mode = #tpu.pipeline_mode<synchronous>, transform_indices = @transform_2, window_bounds = array<i64: 1, 4>}, {pipeline_mode = #tpu.pipeline_mode<synchronous>, transform_indices = @transform_3, window_bounds = array<i64: 1, 4>}, {transform_indices = @transform_4, window_bounds = array<i64: 1, 256, 4>}]} {
    %c0 = arith.constant 0 : index
    %c0_0 = arith.constant 0 : index
    %c0_1 = arith.constant 0 : index
    %c0_2 = arith.constant 0 : index
    %0 = vector.load %arg1[%c0, %c0_0, %c0_1, %c0_2] : memref<1x16x16x4xf32, #tpu.memory_space<vmem>>, vector<1x16x16x4xf32>
    %1 = vector.shape_cast %0 : vector<1x16x16x4xf32> to vector<16x16x4xf32>
    %c0_3 = arith.constant 0 : index
    %c0_4 = arith.constant 0 : index
    %2 = vector.load %arg2[%c0_3, %c0_4] : memref<4x4xf32, #tpu.memory_space<vmem>>, vector<4x4xf32>
    %cst = arith.constant 0.000000e+00 : f32
    %3 = vector.broadcast %cst : f32 to vector<256x4xf32>
    %4 = vector.shape_cast %1 : vector<16x16x4xf32> to vector<256x4xf32>
    %cst_5 = arith.constant dense<0.000000e+00> : vector<256x4xf32>
    %5 = tpu.matmul %4, %2, %cst_5 {dimension_numbers = #tpu.dot_dimension_numbers<[1], [0], [0], [1], [0, 0, 1, 1], [], []>} : vector<256x4xf32>, vector<4x4xf32>, vector<256x4xf32> -> vector<256x4xf32>
    %6 = arith.addf %3, %5 : vector<256x4xf32>
    %c0_6 = arith.constant 0 : index
    %c0_7 = arith.constant 0 : index
    %7 = vector.load %arg3[%c0_6, %c0_7] : memref<1x4xf32, #tpu.memory_space<vmem>>, vector<1x4xf32>
    %8 = vector.broadcast %7 : vector<1x4xf32> to vector<256x4xf32>
    %9 = arith.mulf %6, %8 : vector<256x4xf32>
    %c0_8 = arith.constant 0 : index
    %c0_9 = arith.constant 0 : index
    %10 = vector.load %arg4[%c0_8, %c0_9] : memref<1x4xf32, #tpu.memory_space<vmem>>, vector<1x4xf32>
    %11 = vector.broadcast %10 : vector<1x4xf32> to vector<256x4xf32>
    %12 = arith.addf %9, %11 : vector<256x4xf32>
    %cst_10 = arith.constant 0.000000e+00 : f32
    %13 = vector.broadcast %cst_10 : f32 to vector<256x4xf32>
    %14 = arith.maximumf %12, %13 : vector<256x4xf32>
    %c0_11 = arith.constant 0 : index
    %c0_12 = arith.constant 0 : index
    %c0_13 = arith.constant 0 : index
    %15 = vector.load %arg5[%c0_11, %c0_12, %c0_13] : memref<1x256x4xf32, #tpu.memory_space<vmem>>, vector<1x256x4xf32>
    %16 = vector.shape_cast %15 : vector<1x256x4xf32> to vector<256x4xf32>
    %17 = vector.shape_cast %14 : vector<256x4xf32> to vector<1x256x4xf32>
    tpu.vector_store %arg5[%c0_11, %c0_12, %c0_13], %17 {strides = array<i32>} : memref<1x256x4xf32, #tpu.memory_space<vmem>>, vector<1x256x4xf32>,
    return
  }
  func.func @transform_0(%arg0: i32) -> (i32, i32, i32, i32) {
    %c0_i32 = arith.constant 0 : i32
    %c0_i32_0 = arith.constant 0 : i32
    %c0_i32_1 = arith.constant 0 : i32
    %c0_i32_2 = arith.constant 0 : i32
    return %arg0, %c0_i32, %c0_i32_0, %c0_i32_1 : i32, i32, i32, i32
  }
  func.func @transform_1(%arg0: i32) -> (i32, i32) {
    %c0_i32 = arith.constant 0 : i32
    %c0_i32_0 = arith.constant 0 : i32
    %c0_i32_1 = arith.constant 0 : i32
    return %c0_i32, %c0_i32_0 : i32, i32
  }
  func.func @transform_2(%arg0: i32) -> (i32, i32) {
    %c0_i32 = arith.constant 0 : i32
    %c0_i32_0 = arith.constant 0 : i32
    %c0_i32_1 = arith.constant 0 : i32
    return %c0_i32, %c0_i32_0 : i32, i32
  }
  func.func @transform_3(%arg0: i32) -> (i32, i32) {
    %c0_i32 = arith.constant 0 : i32
    %c0_i32_0 = arith.constant 0 : i32
    %c0_i32_1 = arith.constant 0 : i32
    return %c0_i32, %c0_i32_0 : i32, i32
  }
  func.func @transform_4(%arg0: i32) -> (i32, i32, i32) {
    %c0_i32 = arith.constant 0 : i32
    %c0_i32_0 = arith.constant 0 : i32
    %c0_i32_1 = arith.constant 0 : i32
    return %arg0, %c0_i32, %c0_i32_0 : i32, i32, i32
  }
}

</mosaic_0001>

<bundles_post_ra>
// kernel: tpu_custom_call.1
= control target key start
LH: loop header
LB: loop body
LE: loop exit
PB: predicated region body
PF: predicated region fallthrough
CT: control target
= control target key end

     0   :  { %s928_s15 = smov 0   ;;  %s1161_s0 = inlined_call_operand.vmem [shape: f32[2,16,16,4], index: 0, kind: input, shape index: {}]   ;;  %s1162_s1 = inlined_call_operand.vmem [shape: f32[4,4], index: 1, kind: input, shape index: {}]   ;;  %s1163_s2 = inlined_call_operand.vmem [shape: f32[1,4], index: 2, kind: input, shape index: {}]   ;;  %s1164_s3 = inlined_call_operand.vmem [shape: f32[1,4], index: 3, kind: input, shape index: {}]   ;;  %s1165_s4 = inlined_call_operand.vmem [shape: f32[2,256,4], index: 4, kind: output, shape index: {}]  }
   0x1 LB: > { %s754_s16 = sadd.s32 4294967295, %s901_s15   ;;  %p758_p0 = scmp.ge.s32.totalorder %s901_s15, 1  ;;  %s901_s15 = sphi %s928_s15, %s14_s15  }
   0x2   : > { %p162_p1 = scmp.lt.s32.totalorder %s901_s15, 3 }
   0x4   : > { %p163_p2 = pnand %p758_p0, %p162_p1 }
   0x5   : > { %v230_v0 = vld [vmem:[%s1162_s1] sm:$0xf] (!%p163_p2)  ;;  %vm328_vm0 = vcmask (!%p163_p2), 1043456   ;;  %p188_p3 = scmp.lt.s32.totalorder (!%p163_p2), %s754_s16, 1  ;;  %vm231_vm1 = vcmask (!%p163_p2), 31744  }
   0x6   : > { %166 = sbr.rel (%p163_p2) target bundleno = 267 (0x10b), region = 36  ;;  %835 = vmatprep.subr.msk.mxu0 (!%p163_p2), %vm328_vm0, %v230_v0  ;;  %885 = vmatprep.subr.msk.mxu1 (!%p163_p2), %vm328_vm0, %v230_v0  ;;  %v1016_v33 = vld [vmem:[%s1163_s2] ss:$0 sm:$0xff] (!%p163_p2) }
   0x7   : > { %836 = vmatpush3.msk.msra.mxu0 (!%p163_p2), %vm328_vm0, %v230_v0  ;;  %886 = vmatpush3.msk.msra.mxu1 (!%p163_p2), %vm328_vm0, %v230_v0  ;;  %v1021_v35 = vld [vmem:[%s1164_s3] ss:$0 sm:$0xff] (!%p163_p2) }
   0xd   : > { %s1167_s16 = smov (!%p188_p3, %s754_s16), 1 }
   0xe   : > { %s800_s19 = sshll.u32 %s1167_s16, 8 }
   0xf   : > { %s947_s22 = scalar_lea.vmem %s1161_s0, %s800_s19  ;;  %s1034_s29 = scalar_lea.vmem %s1165_s4, %s800_s19 }
  0x10   : > { %v198_v1 = vld [vmem:[%s947_s22] sm:$0xff]  ;;  %v199_v3 = vld [vmem:[%s947_s22 + $0x8] sm:$0xff]  ;;  %v200_v5 = vld [vmem:[%s947_s22 + $0x10] sm:$0xff] }
  0x11   : > { %v214_v2 = vld [vmem:[%s947_s22 + $0x80] sm:$0xff]  ;;  %837 = vmatprep.mubr.msk.f32.mxu0 %vm231_vm1, %v198_v1  ;;  %v215_v4 = vld [vmem:[%s947_s22 + $0x88] sm:$0xff]  ;;  %v216_v6 = vld [vmem:[%s947_s22 + $0x90] sm:$0xff] }
  0x12   : > { %861 = vmatprep.mubr.msk.f32.mxu1 %vm231_vm1, %v214_v2  ;;  %838 = vmatmul.mubr.msk.f32.vlgmr.msra.gmra.mrb[0].mxu0 %vm231_vm1, %v199_v3  ;;  %v201_v7 = vld [vmem:[%s947_s22 + $0x18] sm:$0xff]  ;;  %v202_v9 = vld [vmem:[%s947_s22 + $0x20] sm:$0xff]  ;;  %v203_v11 = vld [vmem:[%s947_s22 + $0x28] sm:$0xff] }
  0x13   : > { %862 = vmatmul.mubr.msk.f32.vlgmr.msra.gmra.mrb[0].mxu1 %vm231_vm1, %v215_v4  ;;  %840 = vmatprep.mubr.msk.f32.mxu0 %vm231_vm1, %v200_v5  ;;  %v217_v8 = vld [vmem:[%s947_s22 + $0x98] sm:$0xff]  ;;  %v218_v10 = vld [vmem:[%s947_s22 + $0xa0] sm:$0xff]  ;;  %v219_v12 = vld [vmem:[%s947_s22 + $0xa8] sm:$0xff] }
  0x14   : > { %864 = vmatprep.mubr.msk.f32.mxu1 %vm231_vm1, %v216_v6  ;;  %v204_v13 = vld [vmem:[%s947_s22 + $0x30] sm:$0xff]  ;;  %v205_v15 = vld [vmem:[%s947_s22 + $0x38] sm:$0xff]  ;;  %v206_v17 = vld [vmem:[%s947_s22 + $0x40] sm:$0xff] }
  0x15   : > { %v220_v14 = vld [vmem:[%s947_s22 + $0xb0] sm:$0xff]  ;;  %v221_v16 = vld [vmem:[%s947_s22 + $0xb8] sm:$0xff]  ;;  %v222_v18 = vld [vmem:[%s947_s22 + $0xc0] sm:$0xff] }
  0x16   : > { %841 = vmatmul.mubr.msk.f32.gmra.mrb[2].mxu0 %vm231_vm1, %v201_v7  ;;  %v207_v19 = vld [vmem:[%s947_s22 + $0x48] sm:$0xff]  ;;  %v208_v21 = vld [vmem:[%s947_s22 + $0x50] sm:$0xff]  ;;  %v209_v23 = vld [vmem:[%s947_s22 + $0x58] sm:$0xff] }
  0x17   : > { %865 = vmatmul.mubr.msk.f32.gmra.mrb[2].mxu1 %vm231_vm1, %v217_v8  ;;  %843 = vmatprep.mubr.msk.f32.mxu0 %vm231_vm1, %v202_v9  ;;  %v223_v20 = vld [vmem:[%s947_s22 + $0xc8] sm:$0xff]  ;;  %v224_v22 = vld [vmem:[%s947_s22 + $0xd0] sm:$0xff]  ;;  %v225_v24 = vld [vmem:[%s947_s22 + $0xd8] sm:$0xff] }
  0x18   : > { %867 = vmatprep.mubr.msk.f32.mxu1 %vm231_vm1, %v218_v10  ;;  %v210_v25 = vld [vmem:[%s947_s22 + $0x60] sm:$0xff]  ;;  %v211_v27 = vld [vmem:[%s947_s22 + $0x68] sm:$0xff]  ;;  %v212_v29 = vld [vmem:[%s947_s22 + $0x70] sm:$0xff] }
  0x19   : > { %v226_v26 = vld [vmem:[%s947_s22 + $0xe0] sm:$0xff]  ;;  %v227_v28 = vld [vmem:[%s947_s22 + $0xe8] sm:$0xff]  ;;  %v228_v30 = vld [vmem:[%s947_s22 + $0xf0] sm:$0xff] }
  0x1a   : > { %844 = vmatmul.mubr.msk.f32.gmra.mrb[4].mxu0 %vm231_vm1, %v203_v11  ;;  %v213_v31 = vld [vmem:[%s947_s22 + $0x78] sm:$0xff] }
  0x1b   : > { %868 = vmatmul.mubr.msk.f32.gmra.mrb[4].mxu1 %vm231_vm1, %v219_v12  ;;  %846 = vmatprep.mubr.msk.f32.mxu0 %vm231_vm1, %v204_v13  ;;  %v229_v32 = vld [vmem:[%s947_s22 + $0xf8] sm:$0xff] }
  0x1c   : > { %870 = vmatprep.mubr.msk.f32.mxu1 %vm231_vm1, %v220_v14 }
  0x1e   : > { %847 = vmatmul.mubr.msk.f32.gmra.mrb[6].mxu0 %vm231_vm1, %v205_v15 }
  0x1f   : > { %871 = vmatmul.mubr.msk.f32.gmra.mrb[6].mxu1 %vm231_vm1, %v221_v16  ;;  %849 = vmatprep.mubr.msk.f32.mxu0 %vm231_vm1, %v206_v17 }
  0x20   : > { %873 = vmatprep.mubr.msk.f32.mxu1 %vm231_vm1, %v222_v18 }
  0x22   : > { %850 = vmatmul.mubr.msk.f32.gmra.mrb[8].mxu0 %vm231_vm1, %v207_v19 }
  0x23   : > { %874 = vmatmul.mubr.msk.f32.gmra.mrb[8].mxu1 %vm231_vm1, %v223_v20  ;;  %852 = vmatprep.mubr.msk.f32.mxu0 %vm231_vm1, %v208_v21 }
  0x24   : > { %876 = vmatprep.mubr.msk.f32.mxu1 %vm231_vm1, %v224_v22 }
  0x26   : > { %853 = vmatmul.mubr.msk.f32.gmra.mrb[10].mxu0 %vm231_vm1, %v209_v23 }
  0x27   : > { %877 = vmatmul.mubr.msk.f32.gmra.mrb[10].mxu1 %vm231_vm1, %v225_v24  ;;  %855 = vmatprep.mubr.msk.f32.mxu0 %vm231_vm1, %v210_v25 }
  0x28   : > { %879 = vmatprep.mubr.msk.f32.mxu1 %vm231_vm1, %v226_v26 }
  0x2a   : > { %856 = vmatmul.mubr.msk.f32.gmra.mrb[12].mxu0 %vm231_vm1, %v211_v27 }
  0x2b   : > { %880 = vmatmul.mubr.msk.f32.gmra.mrb[12].mxu1 %vm231_vm1, %v227_v28  ;;  %858 = vmatprep.mubr.msk.f32.mxu0 %vm231_vm1, %v212_v29 }
  0x2c   : > { %882 = vmatprep.mubr.msk.f32.mxu1 %vm231_vm1, %v228_v30 }
  0x2e   : > { %859 = vmatmul.mubr.msk.f32.gmra.mrb[14].mxu0 %vm231_vm1, %v213_v31 }
  0x2f   : > { %883 = vmatmul.mubr.msk.f32.gmra.mrb[14].mxu1 %vm231_vm1, %v229_v32 }
  0xe5   : > { %v839_v34 = vpop.f32.mrb[0].mxu0 }
  0xe6   : > { %v863_v36 = vpop.f32.mrb[0].mxu1  ;;  %v565_v37 = vmul.f32 %v839_v34, %v1016_v33  ;;  %v398_v39 = vpop.f32.mrb[1].mxu0 }
  0xe7   : > { %v581_v38 = vmul.f32 %v863_v36, %v1016_v33  ;;  %v478_v40 = vpop.f32.mrb[1].mxu1  ;;  %v564_v41 = vmul.f32 %v1016_v33, %v398_v39 }
  0xe8   : > { %v580_v42 = vmul.f32 %v1016_v33, %v478_v40  ;;  %v604_v43 = vadd.f32 %v1021_v35, %v565_v37 }
  0xe9   : > { %v620_v44 = vadd.f32 %v1021_v35, %v581_v38  ;;  %v603_v45 = vadd.f32 %v1021_v35, %v564_v41  ;;  %v842_v47 = vpop.f32.mrb[2].mxu0 }
  0xea   : > { %v619_v46 = vadd.f32 %v1021_v35, %v580_v42  ;;  %v866_v48 = vpop.f32.mrb[2].mxu1  ;;  %v636_v49 = vmax.f32 %v604_v43, 0.0  ;;  %v567_v51 = vmul.f32 %v842_v47, %v1016_v33  ;;  %v408_v53 = vpop.f32.mrb[3].mxu0 }
  0xeb   : > { %v652_v50 = vmax.f32 %v620_v44, 0.0  ;;  %v583_v52 = vmul.f32 %v866_v48, %v1016_v33  ;;  %v488_v54 = vpop.f32.mrb[3].mxu1  ;;  %v635_v55 = vmax.f32 %v603_v45, 0.0  ;;  %v566_v57 = vmul.f32 %v1016_v33, %v408_v53 }
  0xec   : > { %v651_v56 = vmax.f32 %v619_v46, 0.0  ;;  %v582_v58 = vmul.f32 %v1016_v33, %v488_v54  ;;  %668 = vst.msk [vmem:[%s1034_s29 + $0x8] sm:$0xff] %vm231_vm1, %v636_v49  ;;  %v606_v59 = vadd.f32 %v1021_v35, %v567_v51 }
  0xed   : > { %684 = vst.msk [vmem:[%s1034_s29 + $0x88] sm:$0xff] %vm231_vm1, %v652_v50  ;;  %v622_v60 = vadd.f32 %v1021_v35, %v583_v52  ;;  %667 = vst.msk [vmem:[%s1034_s29] sm:$0xff] %vm231_vm1, %v635_v55  ;;  %v605_v61 = vadd.f32 %v1021_v35, %v566_v57  ;;  %v845_v63 = vpop.f32.mrb[4].mxu0 }
  0xee   : > { %683 = vst.msk [vmem:[%s1034_s29 + $0x80] sm:$0xff] %vm231_vm1, %v651_v56  ;;  %v621_v62 = vadd.f32 %v1021_v35, %v582_v58  ;;  %v869_v0 = vpop.f32.mrb[4].mxu1  ;;  %v638_v1 = vmax.f32 %v606_v59, 0.0  ;;  %v569_v3 = vmul.f32 %v845_v63, %v1016_v33  ;;  %v418_v5 = vpop.f32.mrb[5].mxu0 }
  0xef   : > { %v654_v2 = vmax.f32 %v622_v60, 0.0  ;;  %v585_v4 = vmul.f32 %v869_v0, %v1016_v33  ;;  %v498_v6 = vpop.f32.mrb[5].mxu1  ;;  %v637_v7 = vmax.f32 %v605_v61, 0.0  ;;  %v568_v9 = vmul.f32 %v1016_v33, %v418_v5 }
  0xf0   : > { %v653_v8 = vmax.f32 %v621_v62, 0.0  ;;  %v584_v10 = vmul.f32 %v1016_v33, %v498_v6  ;;  %670 = vst.msk [vmem:[%s1034_s29 + $0x18] sm:$0xff] %vm231_vm1, %v638_v1  ;;  %v608_v11 = vadd.f32 %v1021_v35, %v569_v3 }
  0xf1   : > { %686 = vst.msk [vmem:[%s1034_s29 + $0x98] sm:$0xff] %vm231_vm1, %v654_v2  ;;  %v624_v12 = vadd.f32 %v1021_v35, %v585_v4  ;;  %669 = vst.msk [vmem:[%s1034_s29 + $0x10] sm:$0xff] %vm231_vm1, %v637_v7  ;;  %v607_v13 = vadd.f32 %v1021_v35, %v568_v9  ;;  %v848_v15 = vpop.f32.mrb[6].mxu0 }
  0xf2   : > { %685 = vst.msk [vmem:[%s1034_s29 + $0x90] sm:$0xff] %vm231_vm1, %v653_v8  ;;  %v623_v14 = vadd.f32 %v1021_v35, %v584_v10  ;;  %v872_v16 = vpop.f32.mrb[6].mxu1  ;;  %v640_v17 = vmax.f32 %v608_v11, 0.0  ;;  %v571_v19 = vmul.f32 %v848_v15, %v1016_v33  ;;  %v428_v21 = vpop.f32.mrb[7].mxu0 }
  0xf3   : > { %v656_v18 = vmax.f32 %v624_v12, 0.0  ;;  %v587_v20 = vmul.f32 %v872_v16, %v1016_v33  ;;  %v508_v22 = vpop.f32.mrb[7].mxu1  ;;  %v639_v23 = vmax.f32 %v607_v13, 0.0  ;;  %v570_v25 = vmul.f32 %v1016_v33, %v428_v21 }
  0xf4   : > { %v655_v24 = vmax.f32 %v623_v14, 0.0  ;;  %v586_v26 = vmul.f32 %v1016_v33, %v508_v22  ;;  %672 = vst.msk [vmem:[%s1034_s29 + $0x28] sm:$0xff] %vm231_vm1, %v640_v17  ;;  %v610_v27 = vadd.f32 %v1021_v35, %v571_v19 }
  0xf5   : > { %688 = vst.msk [vmem:[%s1034_s29 + $0xa8] sm:$0xff] %vm231_vm1, %v656_v18  ;;  %v626_v28 = vadd.f32 %v1021_v35, %v587_v20  ;;  %671 = vst.msk [vmem:[%s1034_s29 + $0x20] sm:$0xff] %vm231_vm1, %v639_v23  ;;  %v609_v29 = vadd.f32 %v1021_v35, %v570_v25  ;;  %v851_v31 = vpop.f32.mrb[8].mxu0 }
  0xf6   : > { %687 = vst.msk [vmem:[%s1034_s29 + $0xa0] sm:$0xff] %vm231_vm1, %v655_v24  ;;  %v625_v30 = vadd.f32 %v1021_v35, %v586_v26  ;;  %v875_v32 = vpop.f32.mrb[8].mxu1  ;;  %v642_v34 = vmax.f32 %v610_v27, 0.0  ;;  %v573_v37 = vmul.f32 %v851_v31, %v1016_v33  ;;  %v438_v39 = vpop.f32.mrb[9].mxu0 }
  0xf7   : > { %v658_v36 = vmax.f32 %v626_v28, 0.0  ;;  %v589_v38 = vmul.f32 %v875_v32, %v1016_v33  ;;  %v518_v40 = vpop.f32.mrb[9].mxu1  ;;  %v641_v41 = vmax.f32 %v609_v29, 0.0  ;;  %v572_v43 = vmul.f32 %v1016_v33, %v438_v39 }
  0xf8   : > { %v657_v42 = vmax.f32 %v625_v30, 0.0  ;;  %v588_v44 = vmul.f32 %v1016_v33, %v518_v40  ;;  %674 = vst.msk [vmem:[%s1034_s29 + $0x38] sm:$0xff] %vm231_vm1, %v642_v34  ;;  %v612_v45 = vadd.f32 %v1021_v35, %v573_v37 }
  0xf9   : > { %690 = vst.msk [vmem:[%s1034_s29 + $0xb8] sm:$0xff] %vm231_vm1, %v658_v36  ;;  %v628_v46 = vadd.f32 %v1021_v35, %v589_v38  ;;  %673 = vst.msk [vmem:[%s1034_s29 + $0x30] sm:$0xff] %vm231_vm1, %v641_v41  ;;  %v611_v47 = vadd.f32 %v1021_v35, %v572_v43  ;;  %v854_v49 = vpop.f32.mrb[10].mxu0 }
  0xfa   : > { %689 = vst.msk [vmem:[%s1034_s29 + $0xb0] sm:$0xff] %vm231_vm1, %v657_v42  ;;  %v627_v48 = vadd.f32 %v1021_v35, %v588_v44  ;;  %v878_v50 = vpop.f32.mrb[10].mxu1  ;;  %v644_v51 = vmax.f32 %v612_v45, 0.0  ;;  %v575_v53 = vmul.f32 %v854_v49, %v1016_v33  ;;  %v448_v55 = vpop.f32.mrb[11].mxu0 }
  0xfb   : > { %v660_v52 = vmax.f32 %v628_v46, 0.0  ;;  %v591_v54 = vmul.f32 %v878_v50, %v1016_v33  ;;  %v528_v56 = vpop.f32.mrb[11].mxu1  ;;  %v643_v57 = vmax.f32 %v611_v47, 0.0  ;;  %v574_v59 = vmul.f32 %v1016_v33, %v448_v55 }
  0xfc   : > { %v659_v58 = vmax.f32 %v627_v48, 0.0  ;;  %v590_v60 = vmul.f32 %v1016_v33, %v528_v56  ;;  %676 = vst.msk [vmem:[%s1034_s29 + $0x48] sm:$0xff] %vm231_vm1, %v644_v51  ;;  %v614_v61 = vadd.f32 %v1021_v35, %v575_v53 }
  0xfd   : > { %692 = vst.msk [vmem:[%s1034_s29 + $0xc8] sm:$0xff] %vm231_vm1, %v660_v52  ;;  %v630_v62 = vadd.f32 %v1021_v35, %v591_v54  ;;  %675 = vst.msk [vmem:[%s1034_s29 + $0x40] sm:$0xff] %vm231_vm1, %v643_v57  ;;  %v613_v63 = vadd.f32 %v1021_v35, %v574_v59  ;;  %v857_v1 = vpop.f32.mrb[12].mxu0 }
  0xfe   : > { %691 = vst.msk [vmem:[%s1034_s29 + $0xc0] sm:$0xff] %vm231_vm1, %v659_v58  ;;  %v629_v0 = vadd.f32 %v1021_v35, %v590_v60  ;;  %v881_v2 = vpop.f32.mrb[12].mxu1  ;;  %v646_v3 = vmax.f32 %v614_v61, 0.0  ;;  %v577_v5 = vmul.f32 %v857_v1, %v1016_v33  ;;  %v458_v7 = vpop.f32.mrb[13].mxu0 }
  0xff   : > { %v662_v4 = vmax.f32 %v630_v62, 0.0  ;;  %v593_v6 = vmul.f32 %v881_v2, %v1016_v33  ;;  %v538_v8 = vpop.f32.mrb[13].mxu1  ;;  %v645_v9 = vmax.f32 %v613_v63, 0.0  ;;  %v576_v11 = vmul.f32 %v1016_v33, %v458_v7 }
 0x100   : > { %v661_v10 = vmax.f32 %v629_v0, 0.0  ;;  %v592_v12 = vmul.f32 %v1016_v33, %v538_v8  ;;  %678 = vst.msk [vmem:[%s1034_s29 + $0x58] sm:$0xff] %vm231_vm1, %v646_v3  ;;  %v616_v13 = vadd.f32 %v1021_v35, %v577_v5 }
 0x101   : > { %694 = vst.msk [vmem:[%s1034_s29 + $0xd8] sm:$0xff] %vm231_vm1, %v662_v4  ;;  %v632_v14 = vadd.f32 %v1021_v35, %v593_v6  ;;  %677 = vst.msk [vmem:[%s1034_s29 + $0x50] sm:$0xff] %vm231_vm1, %v645_v9  ;;  %v615_v15 = vadd.f32 %v1021_v35, %v576_v11  ;;  %v860_v17 = vpop.f32.mrb[14].mxu0 }
 0x102   : > { %693 = vst.msk [vmem:[%s1034_s29 + $0xd0] sm:$0xff] %vm231_vm1, %v661_v10  ;;  %v631_v16 = vadd.f32 %v1021_v35, %v592_v12  ;;  %v884_v18 = vpop.f32.mrb[14].mxu1  ;;  %v648_v19 = vmax.f32 %v616_v13, 0.0  ;;  %v579_v21 = vmul.f32 %v860_v17, %v1016_v33  ;;  %v468_v23 = vpop.f32.mrb[15].mxu0 }
 0x103   : > { %v664_v20 = vmax.f32 %v632_v14, 0.0  ;;  %v595_v22 = vmul.f32 %v884_v18, %v1016_v33  ;;  %v548_v24 = vpop.f32.mrb[15].mxu1  ;;  %v647_v25 = vmax.f32 %v615_v15, 0.0  ;;  %v578_v27 = vmul.f32 %v1016_v33, %v468_v23 }
 0x104   : > { %v663_v26 = vmax.f32 %v631_v16, 0.0  ;;  %v594_v28 = vmul.f32 %v1016_v33, %v548_v24  ;;  %680 = vst.msk [vmem:[%s1034_s29 + $0x68] sm:$0xff] %vm231_vm1, %v648_v19  ;;  %v618_v29 = vadd.f32 %v1021_v35, %v579_v21 }
 0x105   : > { %696 = vst.msk [vmem:[%s1034_s29 + $0xe8] sm:$0xff] %vm231_vm1, %v664_v20  ;;  %v634_v30 = vadd.f32 %v1021_v35, %v595_v22  ;;  %679 = vst.msk [vmem:[%s1034_s29 + $0x60] sm:$0xff] %vm231_vm1, %v647_v25  ;;  %v617_v31 = vadd.f32 %v1021_v35, %v578_v27 }
 0x106   : > { %695 = vst.msk [vmem:[%s1034_s29 + $0xe0] sm:$0xff] %vm231_vm1, %v663_v26  ;;  %v633_v32 = vadd.f32 %v1021_v35, %v594_v28  ;;  %v650_v34 = vmax.f32 %v618_v29, 0.0 }
 0x107   : > { %v666_v36 = vmax.f32 %v634_v30, 0.0  ;;  %v649_v33 = vmax.f32 %v617_v31, 0.0 }
 0x108   : > { %v665_v37 = vmax.f32 %v633_v32, 0.0  ;;  %682 = vst.msk [vmem:[%s1034_s29 + $0x78] sm:$0xff] %vm231_vm1, %v650_v34 }
 0x109   : > { %698 = vst.msk [vmem:[%s1034_s29 + $0xf8] sm:$0xff] %vm231_vm1, %v666_v36  ;;  %681 = vst.msk [vmem:[%s1034_s29 + $0x70] sm:$0xff] %vm231_vm1, %v649_v33 }
 0x10a   : > { %697 = vst.msk [vmem:[%s1034_s29 + $0xf0] sm:$0xff] %vm231_vm1, %v665_v37 }
 0x10b PF: > { %s14_s15 = sadd.s32 1, %s901_s15  }
 0x10c   : > { %p11_p4 = scmp.ge.s32.totalorder %s14_s15, 4  }
 0x10e   :  { %13 = sbr.rel (!%p11_p4) target bundleno = 1 (0x1), region = 66 }

</bundles_post_ra>
